<compile_context>
chip_gen: v5e
topology: v5e:2x2
jax: 0.10.0
libtpu: 0.0.40
codegen_flags: <defaults>
</compile_context>

<pallas_src>
import functools

import jax
import jax.numpy as jnp
import numpy as np
from jax.experimental import pallas as pl
from jax.experimental.pallas import tpu as pltpu


# ---------------------------------------------------------------------------
# Pallas kernel: fused SE block for a block of TB batch samples
# ---------------------------------------------------------------------------
def _se_kernel(x_ref, w1_ref, b1_ref, w2_ref, b2_ref, o_ref, *, inv_hw):
    # x_ref block: (TB, C, HWp) -- channels on sublanes, spatial lane-dense.

    # ---- squeeze (read #1): global average pool over spatial (lane reduce) ----
    # Zero padding of HWp contributes nothing; inv_hw uses the true H*W.
    pooled = jnp.sum(x_ref[...].astype(jnp.float32), axis=2) * inv_hw        # (TB, C)

    # ---- excitation FC1 + ReLU on VPU/XLU (K << 128: keep off the MXU) ----
    # w1: (Ch, C), PyTorch layout (out, in):  h[b, j] = sum_c pooled[b, c] * w1[j, c]
    h = jnp.sum(pooled[:, None, :] * w1_ref[...][None, :, :], axis=2) + b1_ref[...]
    h = jnp.maximum(h, 0.0)                                                  # (TB, Ch)

    # ---- excitation FC2 + Sigmoid ----
    # w2: (C, Ch):  s[b, c] = sum_j w2[c, j] * h[b, j]
    s = jnp.sum(h[:, None, :] * w2_ref[...][None, :, :], axis=2) + b2_ref[...]
    s = 1.0 / (1.0 + jnp.exp(-s))                                            # (TB, C), sigmoid (EUP exp)

    # ---- scale (read #2): do NOT keep the big tile live across the excitation ----
    o_ref[...] = (x_ref[...].astype(jnp.float32) * s[:, :, None]).astype(o_ref.dtype)


# ---------------------------------------------------------------------------
# Wrapper
# ---------------------------------------------------------------------------
def se_block_pallas(x_nchw, params, *, target_block_bytes=4 << 20):
    """SEBlock.forward: x * sigmoid(W2 @ relu(W1 @ gap(x) + b1) + b2), NCHW in/out."""
    B, C, H, W = x_nchw.shape
    HW = H * W
    Ch = params["w1"].shape[0]                          # channel // reduction
    dtype = x_nchw.dtype
    itemsize = jnp.dtype(dtype).itemsize

    # ---- lane-dense spatial: pad HW up to a multiple of 128 if needed ----
    HWp = ((HW + 127) // 128) * 128
    x2 = x_nchw.reshape(B, C, HW)                       # free, layout-preserving reshape
    if HWp != HW:
        x2 = jnp.pad(x2, ((0, 0), (0, 0), (0, HWp - HW)))

    # ---- pick TB: ~target_block_bytes per block, keep >= 2 grid steps for megacore ----
    per_sample_bytes = C * HWp * itemsize
    tb = max(1, int(target_block_bytes) // per_sample_bytes)
    tb = min(tb, B)
    if B >= 2:
        tb = min(tb, (B + 1) // 2)                      # never collapse to grid=(1,)
    nb = pl.cdiv(B, tb)

    # ---- pad batch to a multiple of TB (padded rows are never used) ----
    Bp = nb * tb
    if Bp != B:
        x2 = jnp.pad(x2, ((0, Bp - B), (0, 0), (0, 0)))

    # ---- tiny excitation params (resident via constant index_maps) ----
    w1 = params["w1"].astype(jnp.float32)               # (Ch, C)  PyTorch (out, in)
    b1 = params["b1"].reshape(1, Ch).astype(jnp.float32)
    w2 = params["w2"].astype(jnp.float32)               # (C, Ch)
    b2 = params["b2"].reshape(1, C).astype(jnp.float32)

    # Double-buffered input + output blocks + small weights, with margin.
    block_bytes = tb * C * HWp * itemsize
    weight_bytes = (w1.size + b1.size + w2.size + b2.size) * 4
    vmem_limit = int(max(4 * block_bytes + 2 * weight_bytes + (2 << 20), 32 << 20))

    out = pl.pallas_call(
        functools.partial(_se_kernel, inv_hw=1.0 / float(HW)),
        out_shape=jax.ShapeDtypeStruct((Bp, C, HWp), dtype),
        grid=(nb,),
        in_specs=[
            pl.BlockSpec((tb, C, HWp), lambda i: (i, 0, 0)),
            pl.BlockSpec((Ch, C), lambda i: (0, 0)),
            pl.BlockSpec((1, Ch), lambda i: (0, 0)),
            pl.BlockSpec((C, Ch), lambda i: (0, 0)),
            pl.BlockSpec((1, C), lambda i: (0, 0)),
        ],
        out_specs=pl.BlockSpec((tb, C, HWp), lambda i: (i, 0, 0)),
        compiler_params=pltpu.CompilerParams(
            dimension_semantics=("parallel",),
            vmem_limit_bytes=vmem_limit,
        ),
    )(x2, w1, b1, w2, b2)

    # ---- strip padding (no-ops when nothing was padded) ----
    out = out[:B, :, :HW]
    return out.reshape(B, C, H, W)


# ---------------------------------------------------------------------------
# Deterministic parameter init (mirrors nn.Linear shapes: weight = (out, in))
# ---------------------------------------------------------------------------
def init_params(key, channel, reduction=16):
    hidden = channel // reduction
    k1, k2, k3, k4 = jax.random.split(key, 4)
    lim1 = 1.0 / np.sqrt(channel)
    lim2 = 1.0 / np.sqrt(hidden)
    return dict(
        w1=jax.random.uniform(k1, (hidden, channel), jnp.float32, -lim1, lim1),
        b1=jax.random.uniform(k2, (hidden,), jnp.float32, -lim1, lim1),
        w2=jax.random.uniform(k3, (channel, hidden), jnp.float32, -lim2, lim2),
        b2=jax.random.uniform(k4, (channel,), jnp.float32, -lim2, lim2),
    )


# ---------------------------------------------------------------------------
# Pure-JAX reference (mirrors the PyTorch forward exactly)
# ---------------------------------------------------------------------------
def reference_forward(x, params):
    pooled = jnp.mean(x, axis=(2, 3))                                   # (B, C)
    h = jnp.maximum(pooled @ params["w1"].T + params["b1"], 0.0)        # (B, Ch)
    s = jax.nn.sigmoid(h @ params["w2"].T + params["b2"])               # (B, C)
    return x * s[:, :, None, None]


# ---------------------------------------------------------------------------
if __name__ == "__main__":
    REDUCTION = 16
    key = jax.random.PRNGKey(0)
    kx, kp, kx2 = jax.random.split(key, 3)

    # Case 1: lane-dense spatial (16x16 = 256), B=2, C=32 (hidden = 2).
    B, C, H, W = 2, 32, 16, 16
    params = init_params(kp, C, REDUCTION)
    x = jax.random.normal(kx, (B, C, H, W), jnp.float32)    # NCHW like PyTorch
    out = jax.block_until_ready(se_block_pallas(x, params))
    ref = jax.block_until_ready(reference_forward(x, params))
    assert out.shape == (B, C, H, W), out.shape
    np.testing.assert_allclose(np.asarray(out), np.asarray(ref), rtol=2e-4, atol=2e-4)

    # Case 2: non-multiple-of-128 spatial (14x14 = 196) + odd batch -> exercises
    # the HW / batch padding paths and TB > 1 batching.
    B2, H2, W2 = 3, 14, 14
    x_b = jax.random.normal(kx2, (B2, C, H2, W2), jnp.float32)
    out_b = jax.block_until_ready(se_block_pallas(x_b, params))
    ref_b = jax.block_until_ready(reference_forward(x_b, params))
    assert out_b.shape == (B2, C, H2, W2), out_b.shape
    np.testing.assert_allclose(np.asarray(out_b), np.asarray(ref_b), rtol=2e-4, atol=2e-4)

    print("KERNEL_OK")
</pallas_src>

<mosaic_0001>
module attributes {stable_mosaic.version = 11 : i64} {
  func.func @_se_kernel(%arg0: i32, %arg1: memref<1x32x256xf32, #tpu.memory_space<vmem>>, %arg2: memref<2x32xf32, #tpu.memory_space<vmem>>, %arg3: memref<1x2xf32, #tpu.memory_space<vmem>>, %arg4: memref<32x2xf32, #tpu.memory_space<vmem>>, %arg5: memref<1x32xf32, #tpu.memory_space<vmem>>, %arg6: memref<1x32x256xf32, #tpu.memory_space<vmem>>) attributes {dimension_semantics = [#tpu.dimension_semantics<parallel>], iteration_bounds = array<i64: 2>, scalar_prefetch = 0 : i64, scratch_operands = 0 : i64, tpu.core_type = #tpu.core_type<tc>, window_params = [{transform_indices = @transform_0, window_bounds = array<i64: 1, 32, 256>}, {pipeline_mode = #tpu.pipeline_mode<synchronous>, transform_indices = @transform_1, window_bounds = array<i64: 2, 32>}, {pipeline_mode = #tpu.pipeline_mode<synchronous>, transform_indices = @transform_2, window_bounds = array<i64: 1, 2>}, {pipeline_mode = #tpu.pipeline_mode<synchronous>, transform_indices = @transform_3, window_bounds = array<i64: 32, 2>}, {pipeline_mode = #tpu.pipeline_mode<synchronous>, transform_indices = @transform_4, window_bounds = array<i64: 1, 32>}, {transform_indices = @transform_5, window_bounds = array<i64: 1, 32, 256>}]} {
    %c0 = arith.constant 0 : index
    %c0_0 = arith.constant 0 : index
    %c0_1 = arith.constant 0 : index
    %0 = vector.load %arg1[%c0, %c0_0, %c0_1] : memref<1x32x256xf32, #tpu.memory_space<vmem>>, vector<1x32x256xf32>
    %cst = arith.constant dense<0.000000e+00> : vector<1x32xf32>
    %1 = vector.multi_reduction <add>, %0, %cst [2] : vector<1x32x256xf32> to vector<1x32xf32>
    %cst_2 = arith.constant 3.906250e-03 : f32
    %2 = vector.broadcast %cst_2 : f32 to vector<1x32xf32>
    %3 = arith.mulf %1, %2 : vector<1x32xf32>
    %4 = vector.shape_cast %3 : vector<1x32xf32> to vector<1x1x32xf32>
    %c0_3 = arith.constant 0 : index
    %c0_4 = arith.constant 0 : index
    %5 = vector.load %arg2[%c0_3, %c0_4] : memref<2x32xf32, #tpu.memory_space<vmem>>, vector<2x32xf32>
    %6 = vector.shape_cast %5 : vector<2x32xf32> to vector<1x2x32xf32>
    %7 = vector.broadcast %4 : vector<1x1x32xf32> to vector<1x2x32xf32>
    %8 = arith.mulf %7, %6 : vector<1x2x32xf32>
    %cst_5 = arith.constant dense<0.000000e+00> : vector<1x2xf32>
    %9 = vector.multi_reduction <add>, %8, %cst_5 [2] : vector<1x2x32xf32> to vector<1x2xf32>
    %c0_6 = arith.constant 0 : index
    %c0_7 = arith.constant 0 : index
    %10 = vector.load %arg3[%c0_6, %c0_7] : memref<1x2xf32, #tpu.memory_space<vmem>>, vector<1x2xf32>
    %11 = arith.addf %9, %10 : vector<1x2xf32>
    %cst_8 = arith.constant 0.000000e+00 : f32
    %12 = vector.broadcast %cst_8 : f32 to vector<1x2xf32>
    %13 = arith.maximumf %11, %12 : vector<1x2xf32>
    %14 = vector.shape_cast %13 : vector<1x2xf32> to vector<1x1x2xf32>
    %c0_9 = arith.constant 0 : index
    %c0_10 = arith.constant 0 : index
    %15 = vector.load %arg4[%c0_9, %c0_10] : memref<32x2xf32, #tpu.memory_space<vmem>>, vector<32x2xf32>
    %16 = vector.shape_cast %15 : vector<32x2xf32> to vector<1x32x2xf32>
    %17 = vector.broadcast %14 : vector<1x1x2xf32> to vector<1x32x2xf32>
    %18 = arith.mulf %17, %16 : vector<1x32x2xf32>
    %cst_11 = arith.constant dense<0.000000e+00> : vector<1x32xf32>
    %19 = vector.multi_reduction <add>, %18, %cst_11 [2] : vector<1x32x2xf32> to vector<1x32xf32>
    %c0_12 = arith.constant 0 : index
    %c0_13 = arith.constant 0 : index
    %20 = vector.load %arg5[%c0_12, %c0_13] : memref<1x32xf32, #tpu.memory_space<vmem>>, vector<1x32xf32>
    %21 = arith.addf %19, %20 : vector<1x32xf32>
    %cst_14 = arith.constant 0.000000e+00 : f32
    %22 = vector.broadcast %cst_14 : f32 to vector<1x32xf32>
    %23 = arith.subf %22, %21 : vector<1x32xf32>
    %24 = math.exp %23 : vector<1x32xf32>
    %cst_15 = arith.constant 1.000000e+00 : f32
    %25 = vector.broadcast %cst_15 : f32 to vector<1x32xf32>
    %26 = arith.addf %25, %24 : vector<1x32xf32>
    %cst_16 = arith.constant 1.000000e+00 : f32
    %27 = vector.broadcast %cst_16 : f32 to vector<1x32xf32>
    %28 = arith.divf %27, %26 : vector<1x32xf32>
    %c0_17 = arith.constant 0 : index
    %c0_18 = arith.constant 0 : index
    %c0_19 = arith.constant 0 : index
    %29 = vector.load %arg1[%c0_17, %c0_18, %c0_19] : memref<1x32x256xf32, #tpu.memory_space<vmem>>, vector<1x32x256xf32>
    %30 = vector.shape_cast %28 : vector<1x32xf32> to vector<1x32x1xf32>
    %31 = vector.broadcast %30 : vector<1x32x1xf32> to vector<1x32x256xf32>
    %32 = arith.mulf %29, %31 : vector<1x32x256xf32>
    %c0_20 = arith.constant 0 : index
    %c0_21 = arith.constant 0 : index
    %c0_22 = arith.constant 0 : index
    %33 = vector.load %arg6[%c0_20, %c0_21, %c0_22] : memref<1x32x256xf32, #tpu.memory_space<vmem>>, vector<1x32x256xf32>
    tpu.vector_store %arg6[%c0_20, %c0_21, %c0_22], %32 {strides = array<i32>} : memref<1x32x256xf32, #tpu.memory_space<vmem>>, vector<1x32x256xf32>,
    return
  }
  func.func @transform_0(%arg0: i32) -> (i32, i32, i32) {
    %c0_i32 = arith.constant 0 : i32
    %c0_i32_0 = arith.constant 0 : i32
    %c0_i32_1 = arith.constant 0 : i32
    return %arg0, %c0_i32, %c0_i32_0 : i32, i32, i32
  }
  func.func @transform_1(%arg0: i32) -> (i32, i32) {
    %c0_i32 = arith.constant 0 : i32
    %c0_i32_0 = arith.constant 0 : i32
    %c0_i32_1 = arith.constant 0 : i32
    return %c0_i32, %c0_i32_0 : i32, i32
  }
  func.func @transform_2(%arg0: i32) -> (i32, i32) {
    %c0_i32 = arith.constant 0 : i32
    %c0_i32_0 = arith.constant 0 : i32
    %c0_i32_1 = arith.constant 0 : i32
    return %c0_i32, %c0_i32_0 : i32, i32
  }
  func.func @transform_3(%arg0: i32) -> (i32, i32) {
    %c0_i32 = arith.constant 0 : i32
    %c0_i32_0 = arith.constant 0 : i32
    %c0_i32_1 = arith.constant 0 : i32
    return %c0_i32, %c0_i32_0 : i32, i32
  }
  func.func @transform_4(%arg0: i32) -> (i32, i32) {
    %c0_i32 = arith.constant 0 : i32
    %c0_i32_0 = arith.constant 0 : i32
    %c0_i32_1 = arith.constant 0 : i32
    return %c0_i32, %c0_i32_0 : i32, i32
  }
  func.func @transform_5(%arg0: i32) -> (i32, i32, i32) {
    %c0_i32 = arith.constant 0 : i32
    %c0_i32_0 = arith.constant 0 : i32
    %c0_i32_1 = arith.constant 0 : i32
    return %arg0, %c0_i32, %c0_i32_0 : i32, i32, i32
  }
}

</mosaic_0001>

<bundles_post_ra>
// kernel: tpu_custom_call.1
= control target key start
LH: loop header
LB: loop body
LE: loop exit
PB: predicated region body
PF: predicated region fallthrough
CT: control target
= control target key end

     0   :  { %10 = vsyncpa [#allocation3], 0  ;;  %s1824_s0 = inlined_call_operand.hbm [shape: f32[2,32,256], index: 0, kind: input, shape index: {}]   ;;  %s1825_s1 = inlined_call_operand.vmem [shape: f32[2,32], index: 1, kind: input, shape index: {}]   ;;  %s1826_s2 = inlined_call_operand.vmem [shape: f32[1,2], index: 2, kind: input, shape index: {}]   ;;  %s1827_s3 = inlined_call_operand.vmem [shape: f32[32,2], index: 3, kind: input, shape index: {}]   ;;  %s1828_s4 = inlined_call_operand.vmem [shape: f32[1,32], index: 4, kind: input, shape index: {}]   ;;  %s1829_s5 = inlined_call_operand.hbm [shape: f32[2,32,256], index: 5, kind: output, shape index: {}]  }
   0x1   :  { %12 = vsyncpa [#allocation3 + $0x1], 0 }
   0x2   :  { %13 = vsyncpa [#allocation4], 0 }
   0x3   :  { %15 = vsyncpa [#allocation4 + $0x1], 0  ;;  %s1395_s18 = smov 0   ;;  %s1397_s19 = smov 0  }
   0x4   :  { %s1399_s20 = smov 0   ;;  %s1401_s21 = smov 0  }
   0x5 LB: > { %s1416_s22 = sadd.s32 4294967295, %s1358_s21   ;;  %s1153_s23 = sadd.s32 4294967294, %s1358_s21   ;;  %s1358_s21 = sphi %s1401_s21, %s1839_s21   ;;  %s1354_s20 = sphi %s1399_s20, %s1838_s20   ;;  %s1350_s19 = sphi %s1397_s19, %s1837_s19   ;;  %s1346_s18 = sphi %s1395_s18, %s1836_s18  }
   0x6   : > { %s1420_s24 = sadd.s32 1, %s1358_s21   ;;  %s28_s25 = sadd.s32 1, %s1354_s20 }
   0x7   : > { %s25_s26 = ssub.s32 %s1358_s21, %s1420_s24  ;;  %p35_p0 = scmp.ne.s32.totalorder %s1354_s20, %s1350_s19 }
   0x8   : > { %p26_p1 = scmp.eq.s32.totalorder %s25_s26, 0  ;;  %p36_p2 = scmp.eq.s32.totalorder %s1358_s21, 0 }
   0x9   : > { %p41_p3 = scmp.ne.s32.totalorder %s1350_s19, %s1346_s18  ;;  %p42_p4 = scmp.eq.s32.totalorder %s1416_s22, 0 }
   0xa   : > { %s1432_s27 = scalar_select %p26_p1, %s1354_s20, %s28_s25  }
   0xb   : > { %p1434_p5 = por %p36_p2, %p35_p0  ;;  %p1438_p6 = por %p42_p4, %p41_p3 }
   0xc   : > { %p149_p7 = scmp.eq.s32.totalorder %s1416_s22, 1  ;;  %p155_p8 = scmp.eq.s32.totalorder %s1153_s23, 1 }
   0xd   : > { %p1181_p10 = scmp.lt.s32.totalorder %s1358_s21, 2  ;;  %s187_s7 = sand.u32 1, %s1354_s20  }
   0xe   : > { %p1445_p11 = por %p149_p7, %p35_p0  ;;  %p1449_p12 = por %p155_p8, %p41_p3 }
   0xf   : > { %s1167_s8 = sshll.u32 %s1358_s21, 6  ;;  %s1156_s9 = sshll.u32 %s187_s7, 6 }
  0x10   : > { %s196_s12 = scalar_lea.hbm %s1824_s0, %s1167_s8  ;;  %s191_s14 = scalar_lea.vmem [#allocation2], %s1156_s9 }
  0x11   : > { %s197_s13 = sshll.u32 %s196_s12, 4  ;;  %s199_s15 = sshll.u32 %s191_s14, 4  ;;  %s198_s13 = int_to_ptr.hbm [resolvable:$true] %s197_s13  ;;  %s200_s15 = int_to_ptr.vmem [resolvable:$true] %s199_s15 }
  0x12   : > { %p1460_p13 = pnand %p1181_p10, %p1434_p5  ;;  %p1159_p0 = scmp.ge.s32.totalorder %s1358_s21, 1 }
  0x13   : > { %p207_p1 = scmp.lt.s32.totalorder %s1358_s21, 3  ;;  %s188_s17 = scalar_lea.sflag [#allocation3], %s187_s7 }
  0x14   : > { %s1262_s23 = sshra.s32 %s198_s13, 4  ;;  %p1266_p3 = pneg %p1460_p13  ;;  %s1263_s23 = int_to_ptr.hbm [resolvable:$true] %s1262_s23 }
  0x15   : > { %s1264_s25 = scalar_lea.hbm %s1263_s23, 64  ;;  %s1269_s28 = scalar_lea.hbm %s1824_s0, 128 }
  0x16   : > { %p1265_p2 = scmp.ne.s32.totalorder %s1263_s23, %s1264_s25  ;;  %p1270_p5 = scmp.lt.s32.totalorder %s1263_s23, %s1824_s0 }
  0x17   : > { %p1271_p8 = scmp.lt.s32.totalorder %s1269_s28, %s1264_s25 }
  0x18   : > { %p1267_p4 = pnand %p1266_p3, %p1265_p2 }
  0x19   : > { %p1272_p10 = por %p1271_p8, %p1270_p5 }
  0x1a   : > { %p1268_p7 = pneg %p1267_p4 }
  0x1c   : > { %p1273_p9 = pnand %p1272_p10, %p1268_p7 }
  0x1e   : > { %1276 = shalt.err (!%p1273_p9)
}
  0x1f   : > { %s1360_s7 = smov 256   ;;  %s1361_s11 = smov 16  }
  0x20   : > { %1176 = dma.hbm_to_vmem [thread:$0]  (!%p1460_p13), %s198_s13, 1024, %s200_s15, %s188_s17, %s1360_s7, %s1360_s7, %s1361_s11  }
  0x21   : > { %p208_p2 = pnand %p1159_p0, %p207_p1 }
  0x22   : > { %s1481_s12 = sand.u32 (!%p208_p2), 1, %s1350_s19  }
  0x23   : > { %211 = sbr.rel (%p208_p2) target bundleno = 956 (0x3bc), region = 40  ;;  %s1160_s14 = sshll.u32 (!%p208_p2), %s1481_s12, 6 }
  0x24   : > { %s214_s23 = scalar_lea.sflag (!%p208_p2), [#allocation3], %s1481_s12  ;;  %s217_s25 = scalar_lea.vmem (!%p208_p2), [#allocation2], %s1160_s14 }
  0x28   : > { %1337 = dma.done.wait (%p1438_p6), %s214_s23, 1024  }
  0x29   : > { %1339 = vsyncadd (%p1438_p6), %s214_s23, 4294966272  ;;  %v272_v0 = vlaneseq  ;;  %v1503_v4 = vld [vmem:[%s217_s25 + $0x20] sm:$0xff]  ;;  %v1505_v5 = vld [vmem:[%s217_s25 + $0x28] sm:$0xff]  ;;  %v1362_v40 = vmov 0   ;;  %vm374_vm0 = vcmask 130112   ;;  %vm378_vm1 = vcmask 195712  }
  0x2a   : > { %v1507_v6 = vld [vmem:[%s217_s25] sm:$0xff]  ;;  %v259_v7 = vadd.f32 %v1505_v5, %v1503_v4  ;;  %v1511_v8 = vld [vmem:[%s217_s25 + $0x8] sm:$0xff]  ;;  %v1518_v12 = vld [vmem:[%s217_s25 + $0x30] sm:$0xff]  ;;  %vm382_vm2 = vcmask 261312   ;;  %vm391_vm3 = vcmask 1041409   ;;  %vm394_vm4 = vcmask 254976  }
  0x2b   : > { %v1492_v1 = vshrl.u32 %v272_v0, 7  ;;  %v269_v9 = vld [vmem:[%s1825_s1] sm:$0x3]  ;;  %v253_v10 = vadd.f32 %v1511_v8, %v1507_v6  ;;  %v1520_v13 = vld [vmem:[%s217_s25 + $0x38] sm:$0xff]  ;;  %v1522_v14 = vld [vmem:[%s217_s25 + $0x10] sm:$0xff]  ;;  %vm867_vm5 = vcmask 1042434  }
  0x2c   : > { %v271_v11 = vperm.slane %v269_v9, 0  ;;  %260 = vadd.xlane.f32.xlu1 %v259_v7  ;;  %v1524_v15 = vld [vmem:[%s217_s25 + $0x18] sm:$0xff]  ;;  %v262_v16 = vadd.f32 %v1520_v13, %v1518_v12  ;;  %v296_v19 = vperm.slane %v269_v9, 1  ;;  %v410_v20 = vld [vmem:[%s1827_s3] sm:$0xff]  ;;  %v1545_v24 = vld [vmem:[%s1827_s3 + $0x8] sm:$0xff]  ;;  %vm869_vm6 = vcmask 1043459  }
  0x2d   : > { %1220 = vset.pattern.permute.xlu2 %v1492_v1  ;;  %v1496_v2 = vadd.s32 16, %v1492_v1  ;;  %v1499_v3 = vadd.s32 24, %v1492_v1  ;;  %254 = vadd.xlane.f32.xlu0 %v253_v10  ;;  %v256_v17 = vadd.f32 %v1524_v15, %v1522_v14  ;;  %v1531_v18 = vadd.s32 8, %v1492_v1  ;;  %v1552_v27 = vld [vmem:[%s1827_s3 + $0x10] sm:$0xff]  ;;  %v1559_v30 = vld [vmem:[%s1827_s3 + $0x18] sm:$0xff]  ;;  %s244_s29 = scalar_lea.vmem [#allocation5], %s1160_s14 }
  0x2e   : > { %v418_v21 = vperm.slane %v410_v20, 0  ;;  %v432_v22 = vperm.slane %v410_v20, 2  ;;  %v446_v23 = vperm.slane %v410_v20, 4  ;;  %v495_v25 = vperm.slane %v1545_v24, 3  ;;  %v1244_v35 = vld [vmem:[%s1826_s2] ss:$0 sm:$0xff] }
  0x2f   : > { %1222 = vset.pattern.permute.xlu0 %v1496_v2  ;;  %1223 = vset.pattern.permute.xlu1 %v1499_v3  ;;  %v460_v26 = vperm.slane %v410_v20, 6  ;;  %v474_v28 = vperm.slane %v1545_v24, 0  ;;  %v572_v29 = vperm.slane %v1552_v27, 6  ;;  %v488_v31 = vperm.slane %v1545_v24, 2  ;;  %s1168_s13 = sshll.u32 %s1416_s22, 6  ;;  %s1077_s17 = sshll.u32 %s244_s29, 4  ;;  %s1078_s17 = int_to_ptr.vmem [resolvable:$true] %s1077_s17 }
  0x30   : > { %v593_v32 = vperm.slane %v1559_v30, 1  ;;  %v509_v33 = vperm.slane %v1545_v24, 5  ;;  %v614_v34 = vperm.slane %v1559_v30, 4  ;;  %v635_v36 = vperm.slane %v1559_v30, 7  ;;  %s1076_s16 = scalar_lea.hbm %s1829_s5, %s1168_s13  ;;  %s1065_s8 = scalar_lea.sflag [#allocation4], %s1481_s12 }
  0x31   : > { %v523_v37 = vperm.slane %v1545_v24, 7  ;;  %v425_v38 = vperm.slane %v410_v20, 1  ;;  %v439_v39 = vperm.slane %v410_v20, 3  ;;  %v453_v44 = vperm.slane %v410_v20, 5  ;;  %s1079_s26 = sshll.u32 %s1076_s16, 4  ;;  %s1312_s7 = scalar_lea.hbm %s1829_s5, 128  ;;  %s1080_s26 = int_to_ptr.hbm [resolvable:$true] %s1079_s26 }
  0x32   : > { %v467_v46 = vperm.slane %v410_v20, 7  ;;  %v481_v49 = vperm.slane %v1545_v24, 1  ;;  %v502_v54 = vperm.slane %v1545_v24, 4  ;;  %v516_v62 = vperm.slane %v1545_v24, 6  ;;  %s1306_s28 = sshra.s32 %s1080_s26, 4  ;;  %s1307_s28 = int_to_ptr.hbm [resolvable:$true] %s1306_s28 }
  0x33   : > { %vm871_vm7 = vcmask 1044484   ;;  %vm873_vm8 = vcmask 1045509   ;;  %vm875_vm9 = vcmask 1046534   ;;  %vm877_vm10 = vcmask 1047559   ;;  %s1308_s22 = scalar_lea.hbm %s1307_s28, 64  ;;  %p1313_p0 = scmp.lt.s32.totalorder %s1307_s28, %s1829_s5 }
  0x34   : > { %263 = vadd.xlane.f32.xlu1 %v262_v16  ;;  %vm904_vm11 = vcmask 15360   ;;  %p1309_p6 = scmp.ne.s32.totalorder %s1307_s28, %s1308_s22  ;;  %p1314_p1 = scmp.lt.s32.totalorder %s1312_s7, %s1308_s22 }
  0x35   : > { %276 = vperm.xlu2 %1220, %v271_v11   ;;  %257 = vadd.xlane.f32.xlu0 %v256_v17 }
  0x36   : > { %p1310_p9 = pnand %p1309_p6, %p1445_p11  ;;  %p1315_p3 = por %p1314_p1, %p1313_p0 }
  0x38   : > { %p1311_p13 = pneg %p1310_p9 }
  0x3a   : > { %p1316_p4 = pnand %p1315_p3, %p1311_p13 }
  0x3d   : > { %1221 = vset.pattern.permute.xlu2 %v1531_v18 }
  0x45   : > { %282 = vperm.xlu2 %1221, %v271_v11  }
  0x49   : > { %288 = vperm.xlu0 %1222, %v271_v11  }
  0x4d   : > { %1224 = vset.pattern.permute.xlu2 %v1492_v1  ;;  %294 = vperm.xlu1 %1223, %v271_v11  }
  0x51   : > { %1230 = vset.pattern.permute.xlu0 %v1492_v1 }
  0x55   : > { %301 = vperm.xlu2 %1224, %v296_v19   ;;  %1229 = vset.pattern.permute.xlu1 %v1492_v1 }
  0x59   : > { %500 = vperm.xlu0 %1230, %v495_v25  }
  0x5d   : > { %1225 = vset.pattern.permute.xlu2 %v1531_v18  ;;  %423 = vperm.xlu1 %1229, %v418_v21  }
  0x61   : > { %577 = vperm.xlu0 %1230, %v572_v29  }
  0x65   : > { %307 = vperm.xlu2 %1225, %v296_v19   ;;  %437 = vperm.xlu1 %1229, %v432_v22  }
  0x69   : > { %598 = vperm.xlu0 %1230, %v593_v32  }
  0x6d   : > { %1226 = vset.pattern.permute.xlu2 %v1496_v2  ;;  %451 = vperm.xlu1 %1229, %v446_v23  }
  0x71   : > { %619 = vperm.xlu0 %1230, %v614_v34  }
  0x75   : > { %313 = vperm.xlu2 %1226, %v296_v19   ;;  %465 = vperm.xlu1 %1229, %v460_v26  }
  0x79   : > { %640 = vperm.xlu0 %1230, %v635_v36   ;;  %v565_v36 = vperm.slane %v1552_v27, 5 }
  0x7d   : > { %1227 = vset.pattern.permute.xlu2 %v1499_v3  ;;  %479 = vperm.xlu1 %1229, %v474_v28  }
  0x81   : > { %1235 = vset.pattern.permute.xlu0 %v1362_v40 }
  0x85   : > { %319 = vperm.xlu2 %1227, %v296_v19   ;;  %493 = vperm.xlu1 %1229, %v488_v31  }
  0x8d   : > { %1228 = vset.pattern.permute.xlu2 %v1492_v1  ;;  %514 = vperm.xlu1 %1229, %v509_v33   ;;  %v551_v33 = vperm.slane %v1552_v27, 3 }
  0x8f   : > { %v277_v43 = vpop.permute.xlu2 %276 }
  0x95   : > { %405 = vperm.xlu2 %1228, %v1244_v35   ;;  %528 = vperm.xlu1 %1229, %v523_v37   ;;  %v530_v35 = vperm.slane %v1552_v27, 0 }
  0x9d   : > { %430 = vperm.xlu2 %1228, %v425_v38   ;;  %1231 = vset.pattern.permute.xlu1 %v1362_v40 }
  0x9f   : > { %v261_v47 = vpop.xlane.xlu1 %260  ;;  %v283_v48 = vpop.permute.xlu2 %282 }
  0xa0   : > { %v255_v41 = vpop.xlane.xlu0 %254  ;;  %v267_v52 = vmul.f32 0.00390625, %v261_v47 }
  0xa1   : > { %v265_v42 = vmul.f32 0.00390625, %v255_v41  ;;  %v586_v41 = vperm.slane %v1559_v30, 0 }
  0xa3   : > { %v329_v45 = vmul.f32 %v277_v43, %v265_v42 }
  0xa5   : > { %444 = vperm.xlu2 %1228, %v439_v39   ;;  %346 = vperm.xlu1 %1231, %v329_v45   ;;  %v544_v45 = vperm.slane %v1552_v27, 2 }
  0xa7   : > { %v264_v51 = vpop.xlane.xlu1 %263 }
  0xa8   : > { %v258_v50 = vpop.xlane.xlu0 %257  ;;  %v268_v56 = vmul.f32 0.00390625, %v264_v51 }
  0xa9   : > { %v266_v61 = vmul.f32 0.00390625, %v258_v50  ;;  %v628_v50 = vperm.slane %v1559_v30, 6 }
  0xab   : > { %v330_v10 = vmul.f32 %v283_v48, %v266_v61 }
  0xad   : > { %458 = vperm.xlu2 %1228, %v453_v44  }
  0xaf   : > { %v302_v53 = vpop.permute.xlu2 %301 }
  0xb0   : > { %v333_v7 = vmul.f32 %v302_v53, %v265_v42  ;;  %v579_v53 = vperm.slane %v1552_v27, 7 }
  0xb5   : > { %472 = vperm.xlu2 %1228, %v467_v46   ;;  %v607_v46 = vperm.slane %v1559_v30, 3 }
  0xbb   : > { %v289_v55 = vpop.permute.xlu0 %288 }
  0xbc   : > { %v331_v57 = vmul.f32 %v289_v55, %v267_v52 }
  0xbd   : > { %486 = vperm.xlu2 %1228, %v481_v49   ;;  %v558_v49 = vperm.slane %v1552_v27, 4 }
  0xbe   : > { %352 = vperm.xlu1 %1231, %v331_v57  }
  0xbf   : > { %v295_v58 = vpop.permute.xlu1 %294  ;;  %v308_v60 = vpop.permute.xlu2 %307 }
  0xc0   : > { %v332_v59 = vmul.f32 %v295_v58, %v268_v56  ;;  %v334_v63 = vmul.f32 %v308_v60, %v266_v61 }
  0xc2   : > { %355 = vperm.xlu0 %1235, %v332_v59   ;;  %v600_v59 = vperm.slane %v1559_v30, 2 }
  0xc5   : > { %507 = vperm.xlu2 %1228, %v502_v54   ;;  %v1632_v54 = vld [vmem:[%s1828_s4] ss:$0 sm:$0xff] }
  0xc6   : > { %361 = vperm.xlu1 %1231, %v334_v63  }
  0xcb   : > { %v1605_v34 = vpop.permute.xlu0 %500 }
  0xcd   : > { %521 = vperm.xlu2 %1228, %v516_v62  }
  0xcf   : > { %v314_v9 = vpop.permute.xlu2 %313  ;;  %v1578_v19 = vpop.permute.xlu1 %423 }
  0xd0   : > { %v335_v17 = vmul.f32 %v314_v9, %v267_v52 }
  0xd3   : > { %v1613_v39 = vpop.permute.xlu0 %577 }
  0xd5   : > { %1232 = vset.pattern.permute.xlu2 %v1362_v40 }
  0xd6   : > { %358 = vperm.xlu2 %1232, %v333_v7  }
  0xd7   : > { %v1583_v21 = vpop.permute.xlu1 %437 }
  0xdb   : > { %v1620_v44 = vpop.permute.xlu0 %598 }
  0xde   : > { %349 = vperm.xlu2 %1232, %v330_v10  }
  0xdf   : > { %v320_v11 = vpop.permute.xlu2 %319  ;;  %v1589_v24 = vpop.permute.xlu1 %451 }
  0xe0   : > { %v336_v16 = vmul.f32 %v320_v11, %v268_v56  ;;  %v1635_v56 = vand.u32 127, %v272_v0 }
  0xe2   : > { %367 = vperm.xlu1 %1231, %v336_v16   ;;  %v372_v58 = vadd.s32 4294967288, %v1635_v56  ;;  %v376_v61 = vadd.s32 4294967280, %v1635_v56  ;;  %v380_v63 = vadd.s32 4294967272, %v1635_v56 }
  0xe3   : > { %v1626_v51 = vpop.permute.xlu0 %619 }
  0xe6   : > { %364 = vperm.xlu2 %1232, %v335_v17  }
  0xe7   : > { %v1593_v26 = vpop.permute.xlu1 %465 }
  0xea   : > { %1234 = vset.pattern.permute.xlu1 %v1492_v1 }
  0xeb   : > { %v1637_v57 = vpop.permute.xlu0 %640 }
  0xee   : > { %1233 = vset.pattern.permute.xlu2 %v1492_v1  ;;  %v537_v1 = vperm.slane %v1552_v27, 1 }
  0xef   : > { %v1581_v20 = vpop.permute.xlu2 %405  ;;  %v1597_v29 = vpop.permute.xlu1 %479 }
  0xf2   : > { %542 = vperm.xlu1 %1234, %v537_v1  }
  0xf6   : > { %535 = vperm.xlu2 %1233, %v530_v35   ;;  %v621_v35 = vperm.slane %v1559_v30, 5 }
  0xf7   : > { %v1585_v22 = vpop.permute.xlu2 %430  ;;  %v1602_v32 = vpop.permute.xlu1 %493 }
  0xfa   : > { %556 = vperm.xlu1 %1234, %v551_v33  }
  0xfe   : > { %549 = vperm.xlu2 %1233, %v544_v45  }
  0xff   : > { %v1587_v23 = vpop.permute.xlu2 %444  ;;  %v1611_v38 = vpop.permute.xlu1 %514 }
 0x102   : > { %570 = vperm.xlu1 %1234, %v565_v36  }
 0x106   : > { %563 = vperm.xlu2 %1233, %v558_v49  }
 0x107   : > { %v1591_v25 = vpop.permute.xlu2 %458  ;;  %v1618_v43 = vpop.permute.xlu1 %528 }
 0x10a   : > { %591 = vperm.xlu1 %1234, %v586_v41  }
 0x10e   : > { %584 = vperm.xlu2 %1233, %v579_v53  }
 0x10f   : > { %v1595_v28 = vpop.permute.xlu2 %472 }
 0x112   : > { %612 = vperm.xlu1 %1234, %v607_v46  }
 0x116   : > { %605 = vperm.xlu2 %1233, %v600_v59  }
 0x117   : > { %v1600_v31 = vpop.permute.xlu2 %486  ;;  %v347_v47 = vpop.permute.xlu1 %346 }
 0x118   : > { %v371_v62 = vperm.slane %v347_v47, %v1635_v56 }
 0x11a   : > { %633 = vperm.xlu1 %1234, %v628_v50  }
 0x11e   : > { %626 = vperm.xlu2 %1233, %v621_v35  }
 0x11f   : > { %v1609_v37 = vpop.permute.xlu2 %507 }
 0x122   : > { %924 = vperm.xlu1 %1234, %v1632_v54  }
 0x126   : > { %1236 = vset.pattern.permute.xlu2 %v1362_v40 }
 0x127   : > { %v1616_v42 = vpop.permute.xlu2 %521 }
 0x12a   : > { %1237 = vset.pattern.permute.xlu1 %v1362_v40 }
 0x130   : > { %v359_v48 = vpop.permute.xlu2 %358  ;;  %v353_v52 = vpop.permute.xlu1 %352 }
 0x131   : > { %v384_v10 = vperm.slane %v359_v48, %v1635_v56  ;;  %v377_v16 = vperm.slane %v353_v52, %v376_v61 }
 0x134   : > { %v356_v9 = vpop.permute.xlu0 %355 }
 0x135   : > { %v381_v1 = vperm.slane %v356_v9, %v380_v63 }
 0x138   : > { %v350_v55 = vpop.permute.xlu2 %349  ;;  %v362_v60 = vpop.permute.xlu1 %361 }
 0x139   : > { %v373_v27 = vperm.slane %v350_v55, %v372_v58  ;;  %v385_v0 = vperm.slane %v362_v60, %v372_v58 }
 0x13b   : > { %v375_v11 = vsel %vm374_vm0, %v373_v27, %v371_v62  ;;  %v386_v33 = vsel %vm374_vm0, %v385_v0, %v384_v10 }
 0x13c   : > { %v379_v41 = vsel %vm378_vm1, %v377_v16, %v375_v11 }
 0x13d   : > { %v383_v47 = vsel %vm382_vm2, %v381_v1, %v379_v41 }
 0x140   : > { %v365_v7 = vpop.permute.xlu2 %364 }
 0x141   : > { %v387_v17 = vperm.slane %v365_v7, %v376_v61 }
 0x143   : > { %v388_v46 = vsel %vm378_vm1, %v387_v17, %v386_v33 }
 0x154   : > { %v368_v36 = vpop.permute.xlu1 %367 }
 0x155   : > { %v389_v45 = vperm.slane %v368_v36, %v380_v63 }
 0x157   : > { %v390_v49 = vsel %vm382_vm2, %v389_v45, %v388_v46 }
 0x158   : > { %v392_v48 = vsel %vm391_vm3, %v390_v49, %v383_v47 }
 0x159   : > { %v395_v50 = vsel %vm394_vm4, %v392_v48, 0.0 }
 0x15a   : > { %396 = vadd.xlane.f32.xlu0 %v395_v50 }
 0x164   : > { %v543_v61 = vpop.permute.xlu1 %542 }
 0x1cd   : > { %v397_v52 = vpop.xlane.xlu0 %396 }
 0x1ce   : > { %v408_v53 = vadd.f32 %v1581_v20, %v397_v52 }
 0x1d0   : > { %v1651_v30 = vmax.f32 %v408_v53, 0.0 }
 0x1d2   : > { %v674_v55 = vmul.f32 %v1578_v19, %v1651_v30  ;;  %v675_v58 = vmul.f32 %v1585_v22, %v1651_v30  ;;  %v676_v59 = vmul.f32 %v1583_v21, %v1651_v30  ;;  %v681_v60 = vmul.f32 %v1595_v28, %v1651_v30  ;;  %v536_v19 = vpop.permute.xlu2 %535 }
 0x1d3   : > { %v678_v20 = vmul.f32 %v1589_v24, %v1651_v30  ;;  %v677_v27 = vmul.f32 %v1587_v23, %v1651_v30  ;;  %v684_v22 = vmul.f32 %v1602_v32, %v1651_v30  ;;  %v680_v21 = vmul.f32 %v1593_v26, %v1651_v30  ;;  %v557_v26 = vpop.permute.xlu1 %556 }
 0x1d4   : > { %745 = vperm.xlu0 %1235, %v676_v59   ;;  %742 = vperm.xlu1 %1237, %v675_v58   ;;  %v679_v28 = vmul.f32 %v1591_v25, %v1651_v30  ;;  %v687_v23 = vmul.f32 %v1611_v38, %v1651_v30  ;;  %v683_v24 = vmul.f32 %v1600_v31, %v1651_v30 }
 0x1d5   : > { %739 = vperm.xlu2 %1236, %v674_v55   ;;  %v682_v32 = vmul.f32 %v1597_v29, %v1651_v30  ;;  %v690_v63 = vmul.f32 %v536_v19, %v1651_v30  ;;  %v686_v25 = vmul.f32 %v1609_v37, %v1651_v30  ;;  %v685_v0 = vmul.f32 %v1605_v34, %v1651_v30 }
 0x1d6   : > { %v699_v29 = vmul.f32 %v1620_v44, %v1651_v30  ;;  %v689_v7 = vmul.f32 %v1618_v43, %v1651_v30  ;;  %v688_v9 = vmul.f32 %v1616_v42, %v1651_v30  ;;  %v693_v34 = vmul.f32 %v557_v26, %v1651_v30 }
 0x1d7   : > { %v691_v16 = vmul.f32 %v543_v61, %v1651_v30  ;;  %v702_v43 = vmul.f32 %v1626_v51, %v1651_v30  ;;  %v696_v1 = vmul.f32 %v1613_v39, %v1651_v30  ;;  %v705_v51 = vmul.f32 %v1637_v57, %v1651_v30 }
 0x1da   : > { %v550_v62 = vpop.permute.xlu2 %549 }
 0x1db   : > { %v571_v31 = vpop.permute.xlu1 %570  ;;  %v692_v17 = vmul.f32 %v550_v62, %v1651_v30 }
 0x1dc   : > { %760 = vperm.xlu0 %1235, %v681_v60   ;;  %751 = vperm.xlu1 %1237, %v678_v20   ;;  %v695_v46 = vmul.f32 %v571_v31, %v1651_v30 }
 0x1dd   : > { %748 = vperm.xlu2 %1236, %v677_v27  }
 0x1e2   : > { %v564_v38 = vpop.permute.xlu2 %563 }
 0x1e3   : > { %v592_v10 = vpop.permute.xlu1 %591  ;;  %v694_v35 = vmul.f32 %v564_v38, %v1651_v30 }
 0x1e4   : > { %769 = vperm.xlu0 %1235, %v684_v22   ;;  %757 = vperm.xlu1 %1237, %v680_v21   ;;  %v698_v11 = vmul.f32 %v592_v10, %v1651_v30 }
 0x1e5   : > { %754 = vperm.xlu2 %1236, %v679_v28  }
 0x1ea   : > { %v585_v37 = vpop.permute.xlu2 %584 }
 0x1eb   : > { %v613_v33 = vpop.permute.xlu1 %612  ;;  %v697_v47 = vmul.f32 %v585_v37, %v1651_v30 }
 0x1ec   : > { %778 = vperm.xlu0 %1235, %v687_v23   ;;  %766 = vperm.xlu1 %1237, %v683_v24   ;;  %v701_v36 = vmul.f32 %v613_v33, %v1651_v30 }
 0x1ed   : > { %763 = vperm.xlu2 %1236, %v682_v32  }
 0x1f2   : > { %v606_v44 = vpop.permute.xlu2 %605 }
 0x1f3   : > { %v700_v42 = vmul.f32 %v606_v44, %v1651_v30  ;;  %v634_v39 = vpop.permute.xlu1 %633 }
 0x1f4   : > { %787 = vperm.xlu0 %1235, %v690_v63   ;;  %775 = vperm.xlu1 %1237, %v686_v25   ;;  %v704_v49 = vmul.f32 %v634_v39, %v1651_v30 }
 0x1f5   : > { %772 = vperm.xlu2 %1236, %v685_v0  }
 0x1fa   : > { %v627_v41 = vpop.permute.xlu2 %626 }
 0x1fb   : > { %v703_v45 = vmul.f32 %v627_v41, %v1651_v30  ;;  %v1708_v50 = vpop.permute.xlu1 %924 }
 0x1fc   : > { %814 = vperm.xlu0 %1235, %v699_v29   ;;  %784 = vperm.xlu1 %1237, %v689_v7  }
 0x1fd   : > { %781 = vperm.xlu2 %1236, %v688_v9  }
 0x204   : > { %796 = vperm.xlu0 %1235, %v693_v34   ;;  %811 = vperm.xlu1 %1237, %v698_v11  }
 0x205   : > { %790 = vperm.xlu2 %1236, %v691_v16  }
 0x20c   : > { %823 = vperm.xlu0 %1235, %v702_v43   ;;  %817 = vperm.xlu1 %1237, %v700_v42  }
 0x20d   : > { %793 = vperm.xlu2 %1236, %v692_v17  }
 0x214   : > { %805 = vperm.xlu0 %1235, %v696_v1   ;;  %799 = vperm.xlu1 %1237, %v694_v35  }
 0x215   : > { %820 = vperm.xlu2 %1236, %v701_v36  }
 0x21c   : > { %832 = vperm.xlu0 %1235, %v705_v51   ;;  %826 = vperm.xlu1 %1237, %v703_v45  }
 0x21d   : > { %802 = vperm.xlu2 %1236, %v695_v46  }
 0x224   : > { %1238 = vset.pattern.permute.xlu0 %v1531_v18  ;;  %808 = vperm.xlu1 %1237, %v697_v47  }
 0x225   : > { %829 = vperm.xlu2 %1236, %v704_v49  }
 0x22c   : > { %1240 = vset.pattern.permute.xlu1 %v1499_v3 }
 0x22d   : > { %1239 = vset.pattern.permute.xlu2 %v1496_v2 }
 0x22f   : > { %v740_v57 = vpop.permute.xlu2 %739 }
 0x230   : > { %v834_v30 = vperm.slane %v740_v57, %v1635_v56 }
 0x237   : > { %v749_v48 = vpop.permute.xlu2 %748 }
 0x238   : > { %v837_v22 = vperm.slane %v749_v48, %v1635_v56 }
 0x23f   : > { %v755_v52 = vpop.permute.xlu2 %754 }
 0x240   : > { %v839_v23 = vperm.slane %v755_v52, %v1635_v56 }
 0x246   : > { %v746_v53 = vpop.permute.xlu0 %745  ;;  %v743_v55 = vpop.permute.xlu1 %742 }
 0x247   : > { %v764_v58 = vpop.permute.xlu2 %763  ;;  %v835_v59 = vperm.slane %v743_v55, %v1635_v56  ;;  %v836_v18 = vperm.slane %v746_v53, %v1635_v56 }
 0x248   : > { %v842_v9 = vperm.slane %v764_v58, %v1635_v56 }
 0x249   : > { %v866_v3 = vsel %vm391_vm3, %v835_v59, %v834_v30 }
 0x24a   : > { %v868_v2 = vsel %vm867_vm5, %v836_v18, %v866_v3 }
 0x24b   : > { %v870_v21 = vsel %vm869_vm6, %v837_v22, %v868_v2 }
 0x24e   : > { %v761_v60 = vpop.permute.xlu0 %760  ;;  %v752_v20 = vpop.permute.xlu1 %751 }
 0x24f   : > { %v838_v27 = vperm.slane %v752_v20, %v1635_v56  ;;  %v773_v19 = vpop.permute.xlu2 %772  ;;  %v841_v32 = vperm.slane %v761_v60, %v1635_v56 }
 0x250   : > { %v845_v43 = vperm.slane %v773_v19, %v1635_v56 }
 0x251   : > { %v872_v61 = vsel %vm871_vm7, %v838_v27, %v870_v21 }
 0x252   : > { %v874_v26 = vsel %vm873_vm8, %v839_v23, %v872_v61 }
 0x256   : > { %v770_v28 = vpop.permute.xlu0 %769  ;;  %v758_v24 = vpop.permute.xlu1 %757 }
 0x257   : > { %v840_v62 = vperm.slane %v758_v24, %v1635_v56  ;;  %v782_v0 = vpop.permute.xlu2 %781  ;;  %v844_v10 = vperm.slane %v770_v28, %v1635_v56 }
 0x258   : > { %v848_v41 = vperm.slane %v782_v0, %v1635_v56 }
 0x259   : > { %v876_v63 = vsel %vm875_vm9, %v840_v62, %v874_v26 }
 0x25a   : > { %v878_v25 = vsel %vm877_vm10, %v841_v32, %v876_v63 }
 0x25b   : > { %v905_v38 = vsel %vm904_vm11, %v878_v25, 0.0 }
 0x25c   : > { %906 = vadd.xlane.f32.xlu2 %v905_v38 }
 0x25e   : > { %v779_v31 = vpop.permute.xlu0 %778  ;;  %v767_v29 = vpop.permute.xlu1 %766 }
 0x25f   : > { %v843_v7 = vperm.slane %v767_v29, %v1635_v56  ;;  %v791_v34 = vpop.permute.xlu2 %790  ;;  %v847_v33 = vperm.slane %v779_v31, %v1635_v56 }
 0x260   : > { %v851_v19 = vperm.slane %v791_v34, %v1635_v56 }
 0x261   : > { %v879_v37 = vsel %vm391_vm3, %v843_v7, %v842_v9 }
 0x262   : > { %v880_v16 = vsel %vm867_vm5, %v844_v10, %v879_v37 }
 0x263   : > { %v881_v17 = vsel %vm869_vm6, %v845_v43, %v880_v16 }
 0x266   : > { %v788_v11 = vpop.permute.xlu0 %787  ;;  %v776_v44 = vpop.permute.xlu1 %775 }
 0x267   : > { %v846_v42 = vperm.slane %v776_v44, %v1635_v56  ;;  %v794_v45 = vpop.permute.xlu2 %793  ;;  %v850_v20 = vperm.slane %v788_v11, %v1635_v56 }
 0x268   : > { %v852_v21 = vperm.slane %v794_v45, %v1635_v56 }
 0x269   : > { %v882_v1 = vsel %vm871_vm7, %v846_v42, %v881_v17  ;;  %v886_v61 = vsel %vm391_vm3, %v851_v19, %v850_v20 }
 0x26a   : > { %v883_v36 = vsel %vm873_vm8, %v847_v33, %v882_v1  ;;  %v887_v0 = vsel %vm867_vm5, %v852_v21, %v886_v61 }
 0x26b   : > { %v884_v39 = vsel %vm875_vm9, %v848_v41, %v883_v36 }
 0x26e   : > { %v815_v35 = vpop.permute.xlu0 %814  ;;  %v785_v51 = vpop.permute.xlu1 %784 }
 0x26f   : > { %v849_v46 = vperm.slane %v785_v51, %v1635_v56  ;;  %v821_v52 = vpop.permute.xlu2 %820  ;;  %v859_v3 = vperm.slane %v815_v35, %v1635_v56 }
 0x270   : > { %v861_v22 = vperm.slane %v821_v52, %v1635_v56 }
 0x271   : > { %v885_v47 = vsel %vm877_vm10, %v849_v46, %v884_v39 }
 0x272   : > { %v908_v49 = vsel %vm904_vm11, %v885_v47, 0.0 }
 0x273   : > { %909 = vadd.xlane.f32.xlu1 %v908_v49 }
 0x276   : > { %v797_v57 = vpop.permute.xlu0 %796  ;;  %v812_v48 = vpop.permute.xlu1 %811 }
 0x277   : > { %v803_v58 = vpop.permute.xlu2 %802  ;;  %v858_v59 = vperm.slane %v812_v48, %v1635_v56  ;;  %v853_v28 = vperm.slane %v797_v57, %v1635_v56 }
 0x278   : > { %v855_v34 = vperm.slane %v803_v58, %v1635_v56 }
 0x279   : > { %v893_v2 = vsel %vm391_vm3, %v859_v3, %v858_v59  ;;  %v888_v29 = vsel %vm869_vm6, %v853_v28, %v887_v0 }
 0x27e   : > { %v824_v53 = vpop.permute.xlu0 %823  ;;  %v818_v55 = vpop.permute.xlu1 %817 }
 0x27f   : > { %v860_v18 = vperm.slane %v818_v55, %v1635_v56  ;;  %v830_v24 = vpop.permute.xlu2 %829  ;;  %v862_v62 = vperm.slane %v824_v53, %v1635_v56 }
 0x280   : > { %v864_v38 = vperm.slane %v830_v24, %v1635_v56 }
 0x281   : > { %v894_v27 = vsel %vm867_vm5, %v860_v18, %v893_v2 }
 0x282   : > { %v895_v23 = vsel %vm869_vm6, %v861_v22, %v894_v27 }
 0x283   : > { %v896_v31 = vsel %vm871_vm7, %v862_v62, %v895_v23 }
 0x286   : > { %v806_v30 = vpop.permute.xlu0 %805  ;;  %v800_v60 = vpop.permute.xlu1 %799 }
 0x287   : > { %v854_v32 = vperm.slane %v800_v60, %v1635_v56  ;;  %v856_v43 = vperm.slane %v806_v30, %v1635_v56 }
 0x289   : > { %v889_v37 = vsel %vm871_vm7, %v854_v32, %v888_v29 }
 0x28a   : > { %v890_v44 = vsel %vm873_vm8, %v855_v34, %v889_v37 }
 0x28b   : > { %v891_v1 = vsel %vm875_vm9, %v856_v43, %v890_v44 }
 0x28c   : > { %942 = vperm.xlu1 %1240, %v1632_v54  }
 0x28e   : > { %v833_v26 = vpop.permute.xlu0 %832  ;;  %v827_v63 = vpop.permute.xlu1 %826 }
 0x28f   : > { %v863_v25 = vperm.slane %v827_v63, %v1635_v56  ;;  %v865_v7 = vperm.slane %v833_v26, %v1635_v56 }
 0x291   : > { %v897_v9 = vsel %vm873_vm8, %v863_v25, %v896_v31 }
 0x292   : > { %v898_v10 = vsel %vm875_vm9, %v864_v38, %v897_v9 }
 0x293   : > { %v899_v11 = vsel %vm877_vm10, %v865_v7, %v898_v10 }
 0x294   : > { %v914_v16 = vsel %vm904_vm11, %v899_v11, 0.0  ;;  %1242 = vset.pattern.permute.xlu1 %v1362_v40 }
 0x295   : > { %915 = vadd.xlane.f32.xlu2 %v914_v16 }
 0x296   : > { %v809_v42 = vpop.permute.xlu1 %808 }
 0x297   : > { %v857_v17 = vperm.slane %v809_v42, %v1635_v56 }
 0x299   : > { %v892_v33 = vsel %vm877_vm10, %v857_v17, %v891_v1 }
 0x29a   : > { %v911_v35 = vsel %vm904_vm11, %v892_v33, 0.0 }
 0x29b   : > { %912 = vadd.xlane.f32.xlu0 %v911_v35 }
 0x2ad   : > { %936 = vperm.xlu2 %1239, %v1632_v54  }
 0x2af   : > { %930 = vperm.xlu0 %1238, %v1632_v54  }
 0x2b5   : > { %1241 = vset.pattern.permute.xlu2 %v1362_v40 }
 0x2b7   : > { %1243 = vset.pattern.permute.xlu0 %v1362_v40 }
 0x2cf   : > { %v907_v36 = vpop.xlane.xlu2 %906 }
 0x2d0   : > { %v948_v41 = vadd.f32 %v1708_v50, %v907_v36 }
 0x2d2   : > { %v952_v51 = vsub.f32 0.0, %v948_v41 }
 0x2d4   : > { %v956_v56 = vmul.f32 1.442695, %v952_v51 }
 0x2d6   : > { %1246 = vpow2.f32 %v956_v56 }
 0x2dc   : > { %v1247_v45 = vpop.eup %1246 }
 0x2dd   : > { %v964_v46 = vadd.f32 1.0, %v1247_v45 }
 0x2df   : > { %1248 = vrcp.f32 %v964_v46  ;;  %v979_v57 = vand.u32 2147483648, %v964_v46  ;;  %v977_v54 = vand.u32 2147483647, %v964_v46  ;;  %vm973_vm13 = vweird.f32 %v964_v46 }
 0x2e1   : > { %v980_v40 = vor.u32 1.1754944e-38, %v979_v57  ;;  %vm978_vm15 = vcmp.eq.f32.partialorder %v977_v54, 8.507059e+37 }
 0x2e5   : > { %v1249_v39 = vpop.eup %1248 }
 0x2e6   : > { %v969_v47 = vmul.f32 %v1249_v39, %v964_v46  ;;  %vm974_vm12 = vweird.f32 %v1249_v39  ;;  %v910_v55 = vpop.xlane.xlu1 %909 }
 0x2e7   : > { %vm975_vm14 = vmor %vm973_vm13, %vm974_vm12 }
 0x2e8   : > { %v970_v49 = vsub.f32 1.0, %v969_v47 }
 0x2ea   : > { %v971_v48 = vmul.f32 %v1249_v39, %v970_v49 }
 0x2ec   : > { %v972_v52 = vadd.f32 %v1249_v39, %v971_v48 }
 0x2ee   : > { %v976_v53 = vsel %vm975_vm14, %v1249_v39, %v972_v52 }
 0x2ef   : > { %v981_v50 = vsel %vm978_vm15, %v980_v40, %v976_v53 }
 0x2f0   : > { %1030 = vperm.xlu2 %1241, %v981_v50  }
 0x2fe   : > { %v943_v58 = vpop.permute.xlu1 %942 }
 0x308   : > { %v916_v59 = vpop.xlane.xlu2 %915 }
 0x309   : > { %v951_v30 = vadd.f32 %v943_v58, %v916_v59 }
 0x30b   : > { %v955_v18 = vsub.f32 0.0, %v951_v30 }
 0x30d   : > { %v962_v60 = vmul.f32 1.442695, %v955_v18 }
 0x30e   : > { %v913_v3 = vpop.xlane.xlu0 %912 }
 0x30f   : > { %1250 = vpow2.f32 %v962_v60 }
 0x310   : > { %v937_v20 = vpop.permute.xlu2 %936 }
 0x311   : > { %v950_v2 = vadd.f32 %v937_v20, %v913_v3 }
 0x313   : > { %v954_v27 = vsub.f32 0.0, %v950_v2 }
 0x315   : > { %v1251_v19 = vpop.eup %1250  ;;  %v960_v22 = vmul.f32 1.442695, %v954_v27 }
 0x316   : > { %v967_v21 = vadd.f32 1.0, %v1251_v19 }
 0x317   : > { %1252 = vpow2.f32 %v960_v22 }
 0x318   : > { %1254 = vrcp.f32 %v967_v21  ;;  %v1024_v63 = vand.u32 2147483648, %v967_v21  ;;  %v1022_v0 = vand.u32 2147483647, %v967_v21  ;;  %vm1018_vm1 = vweird.f32 %v967_v21 }
 0x31a   : > { %v1025_v9 = vor.u32 1.1754944e-38, %v1024_v63  ;;  %vm1023_vm3 = vcmp.eq.f32.partialorder %v1022_v0, 8.507059e+37 }
 0x31d   : > { %v1253_v61 = vpop.eup %1252 }
 0x31e   : > { %v1255_v28 = vpop.eup %1254  ;;  %v966_v23 = vadd.f32 1.0, %v1253_v61 }
 0x31f   : > { %v1014_v24 = vmul.f32 %v1255_v28, %v967_v21  ;;  %vm1019_vm0 = vweird.f32 %v1255_v28 }
 0x320   : > { %1256 = vrcp.f32 %v966_v23  ;;  %vm1020_vm2 = vmor %vm1018_vm1, %vm1019_vm0  ;;  %v1009_v16 = vand.u32 2147483648, %v966_v23  ;;  %v1007_v43 = vand.u32 2147483647, %v966_v23  ;;  %vm1003_vm5 = vweird.f32 %v966_v23 }
 0x321   : > { %v931_v62 = vpop.permute.xlu0 %930  ;;  %v1015_v32 = vsub.f32 1.0, %v1014_v24 }
 0x322   : > { %v949_v26 = vadd.f32 %v931_v62, %v910_v55  ;;  %v1010_v1 = vor.u32 1.1754944e-38, %v1009_v16  ;;  %vm1008_vm7 = vcmp.eq.f32.partialorder %v1007_v43, 8.507059e+37 }
 0x323   : > { %v1016_v25 = vmul.f32 %v1255_v28, %v1015_v32 }
 0x324   : > { %v953_v38 = vsub.f32 0.0, %v949_v26 }
 0x325   : > { %v1017_v31 = vadd.f32 %v1255_v28, %v1016_v25 }
 0x326   : > { %v1257_v29 = vpop.eup %1256  ;;  %v958_v7 = vmul.f32 1.442695, %v953_v38 }
 0x327   : > { %v1021_v37 = vsel %vm1020_vm2, %v1255_v28, %v1017_v31  ;;  %v999_v10 = vmul.f32 %v1257_v29, %v966_v23  ;;  %vm1004_vm4 = vweird.f32 %v1257_v29 }
 0x328   : > { %1258 = vpow2.f32 %v958_v7  ;;  %v1026_v34 = vsel %vm1023_vm3, %v1025_v9, %v1021_v37  ;;  %vm1005_vm6 = vmor %vm1003_vm5, %vm1004_vm4 }
 0x329   : > { %1045 = vperm.xlu0 %1243, %v1026_v34   ;;  %v1000_v11 = vsub.f32 1.0, %v999_v10 }
 0x32b   : > { %v1001_v44 = vmul.f32 %v1257_v29, %v1000_v11 }
 0x32d   : > { %v1002_v42 = vadd.f32 %v1257_v29, %v1001_v44 }
 0x32e   : > { %v1259_v17 = vpop.eup %1258 }
 0x32f   : > { %v965_v33 = vadd.f32 1.0, %v1259_v17  ;;  %v1006_v35 = vsel %vm1005_vm6, %v1257_v29, %v1002_v42 }
 0x330   : > { %v1011_v36 = vsel %vm1008_vm7, %v1010_v1, %v1006_v35 }
 0x331   : > { %1260 = vrcp.f32 %v965_v33  ;;  %1040 = vperm.xlu2 %1241, %v1011_v36   ;;  %v994_v45 = vand.u32 2147483648, %v965_v33  ;;  %v992_v39 = vand.u32 2147483647, %v965_v33  ;;  %vm988_vm9 = vweird.f32 %v965_v33 }
 0x333   : > { %v995_v49 = vor.u32 1.1754944e-38, %v994_v45  ;;  %vm993_vm11 = vcmp.eq.f32.partialorder %v992_v39, 8.507059e+37 }
 0x337   : > { %v1261_v41 = vpop.eup %1260 }
 0x338   : > { %v984_v51 = vmul.f32 %v1261_v41, %v965_v33  ;;  %vm989_vm8 = vweird.f32 %v1261_v41 }
 0x339   : > { %vm990_vm10 = vmor %vm988_vm9, %vm989_vm8 }
 0x33a   : > { %v985_v56 = vsub.f32 1.0, %v984_v51 }
 0x33c   : > { %v986_v46 = vmul.f32 %v1261_v41, %v985_v56 }
 0x33e   : > { %v987_v47 = vadd.f32 %v1261_v41, %v986_v46 }
 0x340   : > { %v991_v57 = vsel %vm990_vm10, %v1261_v41, %v987_v47 }
 0x341   : > { %v996_v48 = vsel %vm993_vm11, %v995_v49, %v991_v57 }
 0x342   : > { %1035 = vperm.xlu1 %1242, %v996_v48  }
 0x34a   : > { %v1031_v54 = vpop.permute.xlu2 %1030 }
 0x34b   : > { %v1048_v52 = vmul.f32 %v1031_v54, %v1507_v6  ;;  %v1049_v40 = vmul.f32 %v1031_v54, %v1511_v8 }
 0x34d   : > { %1056 = vst [vmem:[%s244_s29] sm:$0xff] %v1048_v52 }
 0x34e   : > { %1057 = vst [vmem:[%s244_s29 + $0x8] sm:$0xff] %v1049_v40 }
 0x38b   : > { %v1041_v53 = vpop.permute.xlu2 %1040 }
 0x38c   : > { %v1052_v50 = vmul.f32 %v1041_v53, %v1503_v4  ;;  %v1053_v55 = vmul.f32 %v1041_v53, %v1505_v5 }
 0x38e   : > { %1060 = vst [vmem:[%s244_s29 + $0x20] sm:$0xff] %v1052_v50 }
 0x38f   : > { %1061 = vst [vmem:[%s244_s29 + $0x28] sm:$0xff] %v1053_v55 }
 0x39b   : > { %v1046_v58 = vpop.permute.xlu0 %1045 }
 0x39c   : > { %v1054_v59 = vmul.f32 %v1046_v58, %v1518_v12  ;;  %v1055_v30 = vmul.f32 %v1046_v58, %v1520_v13 }
 0x39e   : > { %1062 = vst [vmem:[%s244_s29 + $0x30] sm:$0xff] %v1054_v59 }
 0x39f   : > { %1063 = vst [vmem:[%s244_s29 + $0x38] sm:$0xff] %v1055_v30 }
 0x3b4   : > { %v1036_v4 = vpop.permute.xlu1 %1035 }
 0x3b5   : > { %v1050_v5 = vmul.f32 %v1036_v4, %v1522_v14  ;;  %v1051_v6 = vmul.f32 %v1036_v4, %v1524_v15 }
 0x3b7   : > { %1058 = vst [vmem:[%s244_s29 + $0x10] sm:$0xff] %v1050_v5 }
 0x3b8   : > { %1059 = vst [vmem:[%s244_s29 + $0x18] sm:$0xff] %v1051_v6 }
 0x3b9   : > { %1319 = shalt.err (!%p1316_p4)
}
 0x3ba   : > { %s1363_s12 = smov 256   ;;  %s1364_s25 = smov 16  }
 0x3bb   : > { %1171 = dma.vmem_to_hbm [thread:$0]  (%p1445_p11), %s1078_s17, 1024, %s1080_s26, %s1065_s8, %s1363_s12, %s1363_s12, %s1364_s25  }
 0x3bc PF: > { %s1094_s29 = sand.u32 1, %s1346_s18   ;;  %p1835_p7 = scmp.ge.s32.totalorder %s1358_s21, 2 }
 0x3bd   : > { %s1095_s13 = scalar_lea.sflag [#allocation4], %s1094_s29 }
 0x3be   : > { %p1178_p5 = pnand %p1835_p7, %p1449_p12 }
 0x3c0   : > { %p1179_p8 = pneg %p1178_p5 }
 0x3c2   : > { %1341 = dma.done.wait (%p1179_p8), %s1095_s13, 1024  }
 0x3c3   : > { %1343 = vsyncadd (%p1179_p8), %s1095_s13, 4294966272  ;;  %p18_p10 = scmp.ge.s32.totalorder %s1420_s24, 4   ;;  %s1836_s18 = smov %s1350_s19 }
 0x3c4   : > { %s1837_s19 = smov %s1354_s20  ;;  %s1838_s20 = smov %s1432_s27 }
 0x3c5   : > { %s1839_s21 = smov %s1420_s24  ;;  %20 = sbr.rel (!%p18_p10) target bundleno = 5 (0x5), region = 85 }
 0x3ca   :  { %1101 = vsyncpa [#allocation3], 1 }
 0x3cb   :  { %1103 = vsyncpa [#allocation3 + $0x1], 1 }
 0x3cc   :  { %1104 = vsyncpa [#allocation4], 1 }
 0x3cd   :  { %1106 = vsyncpa [#allocation4 + $0x1], 1 }

</bundles_post_ra>
